<compile_context>
chip_gen: v7x
topology: tpu7x:2x2x1
jax: 0.10.0
libtpu: 0.0.40
codegen_flags: <defaults>
</compile_context>

<pallas_src>
import functools

import jax
import jax.numpy as jnp
import numpy as np
from jax.experimental import pallas as pl
from jax.experimental.pallas import tpu as pltpu


# ------------------------------ Pallas kernel ------------------------------ #

def attention_kernel(x_ref, wq_ref, bq_ref, wk_ref, bk_ref, wv_ref, bv_ref,
                     wo_ref, bo_ref, attw_ref, out_ref, kT_scratch, v_scratch,
                     *, scale, q_tile, nq_inner, matmul_dtype, approx_recip):
    c = pl.program_id(1)    # q-split (megacore) axis
    qi = pl.program_id(2)   # q-tile axis within this split

    # ---- K^T / V for the whole sequence: once per (batch, split) ----
    @pl.when(qi == 0)
    def _():
        x_full = x_ref[0]                                           # (S, E)
        k = jnp.dot(x_full, wk_ref[...],
                    preferred_element_type=jnp.float32) + bk_ref[...]   # (S, L) f32
        v = jnp.dot(x_full, wv_ref[...],
                    preferred_element_type=jnp.float32) + bv_ref[...]   # (S, L) f32
        # Transpose ONCE here (f32 XLU transpose), so every q-tile's scores
        # matmul is a plain NN contraction with no per-tile vxpose.
        kT_scratch[...] = k.T.astype(kT_scratch.dtype)              # (L, S)
        v_scratch[...] = v.astype(v_scratch.dtype)                  # (S, L)

    # ---- Q for this query-row tile (sliced in-kernel: x DMA'd once) ----
    row0 = pl.multiple_of((c * nq_inner + qi) * q_tile, q_tile)
    xq = x_ref[0, pl.ds(row0, q_tile), :]                           # (TQ, E)
    q = jnp.dot(xq, wq_ref[...],
                preferred_element_type=jnp.float32) + bq_ref[...]   # (TQ, L) f32
    q = q * scale                    # fold 1/sqrt(E) into the small (TQ, L) tensor

    # ---- scores + softmax (f32 elementwise; v5e-safe) ----
    scores = jnp.dot(q.astype(matmul_dtype), kT_scratch[...],
                     preferred_element_type=jnp.float32)            # (TQ, S)
    m = jnp.max(scores, axis=-1, keepdims=True)
    e = jnp.exp(scores - m)
    inv = pl.reciprocal(jnp.sum(e, axis=-1, keepdims=True), approx=approx_recip)
    # Write the weights straight into the output ref (no extra (TQ, S) live
    # temporary) and feed the P.V matmul from it.
    attw_ref[0] = (e * inv).astype(attw_ref.dtype)

    # ---- attention output + out projection ----
    att = jnp.dot(attw_ref[0].astype(matmul_dtype), v_scratch[...],
                  preferred_element_type=jnp.float32)                # (TQ, L)
    out = jnp.dot(att.astype(matmul_dtype), wo_ref[...],
                  preferred_element_type=jnp.float32) + bo_ref[...]  # (TQ, E_out)
    out_ref[0] = out.astype(out_ref.dtype)


# --------------------------------- Wrapper ---------------------------------- #

def attention_forward(x, params, *, q_tile=None, q_splits=None,
                      matmul_dtype=jnp.bfloat16, attw_dtype=jnp.float32):
    B, S, E = x.shape
    L = params["wq"].shape[1]
    E_out = params["wo"].shape[1]

    if q_tile is None:
        # 128 rows fully feed the v5e MXU and keep the resident K^T/V scratch +
        # double-buffered (1, TQ, S) output blocks inside v7x's 64 MiB VMEM.
        q_tile = S if S <= 128 else 128
    assert S % q_tile == 0, "sequence length must be divisible by q_tile"
    nq = S // q_tile

    if q_splits is None:
        # With only the batch axis parallel, one v7x TensorCore idles when
        # B == 1; split the q-tiles across cores instead (K/V recomputed per
        # split, which is cheap vs. an idle core).
        q_splits = 2 if (B == 1 and nq >= 2 and nq % 2 == 0) else 1
    assert nq % q_splits == 0
    nq_inner = nq // q_splits

    scale = 1.0 / float(E) ** 0.5
    approx_recip = jnp.dtype(matmul_dtype) != jnp.dtype(jnp.float32)

    # Cast matmul operands once at the boundary: halves x / weight HBM traffic
    # and VMEM residency on the bf16 path. Biases stay f32 (added to the f32
    # accumulator), softmax stays f32 (v5e VPU/EUP have no bf16 path).
    xc = x.astype(matmul_dtype)
    wq = params["wq"].astype(matmul_dtype)
    wk = params["wk"].astype(matmul_dtype)
    wv = params["wv"].astype(matmul_dtype)
    wo = params["wo"].astype(matmul_dtype)

    kernel = functools.partial(
        attention_kernel, scale=scale, q_tile=q_tile, nq_inner=nq_inner,
        matmul_dtype=matmul_dtype, approx_recip=approx_recip)

    md_bytes = jnp.dtype(matmul_dtype).itemsize
    cost = pl.CostEstimate(
        flops=int(2 * B * S * (3 * E * L + 2 * S * L + L * E_out)),
        transcendentals=int(B * S * S),
        bytes_accessed=int(B * S * E * md_bytes                       # x read
                           + (3 * E * L + L * E_out) * md_bytes       # weights
                           + B * S * S * jnp.dtype(attw_dtype).itemsize  # attw
                           + B * S * E_out * 4),                      # output
    )

    attw, out = pl.pallas_call(
        kernel,
        out_shape=(
            jax.ShapeDtypeStruct((B, S, S), attw_dtype),
            jax.ShapeDtypeStruct((B, S, E_out), jnp.float32),
        ),
        grid_spec=pltpu.PrefetchScalarGridSpec(
            num_scalar_prefetch=0,
            grid=(B, q_splits, nq_inner),
            in_specs=[
                pl.BlockSpec((1, S, E), lambda b, c, qi: (b, 0, 0)),   # x (full seq)
                pl.BlockSpec((E, L), lambda b, c, qi: (0, 0)),         # Wq (resident)
                pl.BlockSpec((1, L), lambda b, c, qi: (0, 0)),         # bq
                pl.BlockSpec((E, L), lambda b, c, qi: (0, 0)),         # Wk
                pl.BlockSpec((1, L), lambda b, c, qi: (0, 0)),         # bk
                pl.BlockSpec((E, L), lambda b, c, qi: (0, 0)),         # Wv
                pl.BlockSpec((1, L), lambda b, c, qi: (0, 0)),         # bv
                pl.BlockSpec((L, E_out), lambda b, c, qi: (0, 0)),     # Wo
                pl.BlockSpec((1, E_out), lambda b, c, qi: (0, 0)),     # bo
            ],
            out_specs=(
                pl.BlockSpec((1, q_tile, S),
                             lambda b, c, qi: (b, c * nq_inner + qi, 0)),
                pl.BlockSpec((1, q_tile, E_out),
                             lambda b, c, qi: (b, c * nq_inner + qi, 0)),
            ),
            scratch_shapes=[
                pltpu.VMEM((L, S), matmul_dtype),   # K^T, resident across q tiles
                pltpu.VMEM((S, L), matmul_dtype),   # V,   resident across q tiles
            ],
        ),
        compiler_params=pltpu.CompilerParams(
            # b and the q-split axes shard across TensorCores; the inner q-tile
            # axis reuses the K^T/V scratch so it must stay "arbitrary".
            dimension_semantics=("parallel", "parallel", "arbitrary"),
            # Raise the scoped VMEM limit (16 MiB default on v5e, 32 MiB on
            # v6e/v7x); 64 MiB fits every generation's physical VMEM.
            vmem_limit_bytes=64 * 1024 * 1024,
        ),
        cost_estimate=cost,
    )(xc, wq, params["bq"], wk, params["bk"], wv, params["bv"], wo, params["bo"])
    return attw, out


# ---------------------------- Pure-JAX reference ---------------------------- #

def attention_reference(x, p):
    E = x.shape[-1]
    q = x @ p["wq"] + p["bq"][0]
    k = x @ p["wk"] + p["bk"][0]
    v = x @ p["wv"] + p["bv"][0]
    scores = jnp.einsum("bqd,bkd->bqk", q, k) / (E ** 0.5)
    w = jax.nn.softmax(scores, axis=-1)
    att = jnp.einsum("bqk,bkd->bqd", w, v)
    out = att @ p["wo"] + p["bo"][0]
    return w, out


# ----------------------------------- Main ----------------------------------- #

if __name__ == "__main__":
    # Small shapes consistent with the module: batch=2, seq=8,
    # embed_dim=32, latent_dim=16, args.embed_dim (out proj) = 32.
    B, S, E, L = 2, 8, 32, 16
    E_OUT = E

    key = jax.random.PRNGKey(0)
    ks = jax.random.split(key, 10)

    def init(k, shape, scale=0.1):
        return (scale * jax.random.normal(k, shape)).astype(jnp.float32)

    params = {
        # weights stored as (in, out); biases as (1, out) for clean 2D VMEM refs
        "wq": init(ks[0], (E, L)), "bq": init(ks[1], (1, L)),
        "wk": init(ks[2], (E, L)), "bk": init(ks[3], (1, L)),
        "wv": init(ks[4], (E, L)), "bv": init(ks[5], (1, L)),
        "wo": init(ks[6], (L, E_OUT)), "bo": init(ks[7], (1, E_OUT)),
    }
    x = init(ks[8], (B, S, E), scale=1.0)

    r_w, r_out = attention_reference(x, params)

    # f32 matmul path (exact reciprocal) — tight correctness check.
    attw, out = attention_forward(x, params, matmul_dtype=jnp.float32)
    jax.block_until_ready((attw, out))
    np.testing.assert_allclose(np.asarray(attw), np.asarray(r_w),
                               rtol=1e-5, atol=1e-5)
    np.testing.assert_allclose(np.asarray(out), np.asarray(r_out),
                               rtol=1e-5, atol=1e-5)

    # Default fast path: bf16 matmul operands (f32 accumulation), bf16
    # att_weights writeback, approx EUP reciprocal — looser tolerance.
    attw_bf, out_bf = attention_forward(x, params, attw_dtype=jnp.bfloat16)
    jax.block_until_ready((attw_bf, out_bf))
    np.testing.assert_allclose(np.asarray(attw_bf).astype(np.float32),
                               np.asarray(r_w), rtol=5e-2, atol=5e-2)
    np.testing.assert_allclose(np.asarray(out_bf), np.asarray(r_out),
                               rtol=5e-2, atol=5e-2)

    # Multi-q-tile + megacore-split path (B=1 auto-splits q tiles across the
    # "parallel" split axis); f32 for a tight check of the tiling/index maps.
    B2, S2 = 1, 16
    x2 = init(ks[9], (B2, S2, E), scale=1.0)
    r_w2, r_out2 = attention_reference(x2, params)
    attw2, out2 = attention_forward(x2, params, q_tile=8,
                                    matmul_dtype=jnp.float32)
    jax.block_until_ready((attw2, out2))
    np.testing.assert_allclose(np.asarray(attw2), np.asarray(r_w2),
                               rtol=1e-5, atol=1e-5)
    np.testing.assert_allclose(np.asarray(out2), np.asarray(r_out2),
                               rtol=1e-5, atol=1e-5)

    assert attw.shape == (B, S, S) and out.shape == (B, S, E_OUT)
    print("KERNEL_OK")
</pallas_src>

<mosaic_0001>
module attributes {stable_mosaic.version = 11 : i64} {
  func.func @attention_kernel(%arg0: i32, %arg1: i32, %arg2: i32, %arg3: memref<1x8x32xf32, #tpu.memory_space<vmem>>, %arg4: memref<32x16xf32, #tpu.memory_space<vmem>>, %arg5: memref<1x16xf32, #tpu.memory_space<vmem>>, %arg6: memref<32x16xf32, #tpu.memory_space<vmem>>, %arg7: memref<1x16xf32, #tpu.memory_space<vmem>>, %arg8: memref<32x16xf32, #tpu.memory_space<vmem>>, %arg9: memref<1x16xf32, #tpu.memory_space<vmem>>, %arg10: memref<16x32xf32, #tpu.memory_space<vmem>>, %arg11: memref<1x32xf32, #tpu.memory_space<vmem>>, %arg12: memref<1x8x8xf32, #tpu.memory_space<vmem>>, %arg13: memref<1x8x32xf32, #tpu.memory_space<vmem>>, %arg14: memref<16x8xf32, #tpu.memory_space<vmem>>, %arg15: memref<8x16xf32, #tpu.memory_space<vmem>>) attributes {dimension_semantics = [#tpu.dimension_semantics<parallel>, #tpu.dimension_semantics<parallel>, #tpu.dimension_semantics<arbitrary>], iteration_bounds = array<i64: 2, 1, 1>, scalar_prefetch = 0 : i64, scratch_operands = 2 : i64, tpu.core_type = #tpu.core_type<tc>, window_params = [{transform_indices = @transform_0, window_bounds = array<i64: 1, 8, 32>}, {pipeline_mode = #tpu.pipeline_mode<synchronous>, transform_indices = @transform_1, window_bounds = array<i64: 32, 16>}, {pipeline_mode = #tpu.pipeline_mode<synchronous>, transform_indices = @transform_2, window_bounds = array<i64: 1, 16>}, {pipeline_mode = #tpu.pipeline_mode<synchronous>, transform_indices = @transform_3, window_bounds = array<i64: 32, 16>}, {pipeline_mode = #tpu.pipeline_mode<synchronous>, transform_indices = @transform_4, window_bounds = array<i64: 1, 16>}, {pipeline_mode = #tpu.pipeline_mode<synchronous>, transform_indices = @transform_5, window_bounds = array<i64: 32, 16>}, {pipeline_mode = #tpu.pipeline_mode<synchronous>, transform_indices = @transform_6, window_bounds = array<i64: 1, 16>}, {pipeline_mode = #tpu.pipeline_mode<synchronous>, transform_indices = @transform_7, window_bounds = array<i64: 16, 32>}, {pipeline_mode = #tpu.pipeline_mode<synchronous>, transform_indices = @transform_8, window_bounds = array<i64: 1, 32>}, {transform_indices = @transform_9, window_bounds = array<i64: 1, 8, 8>}, {transform_indices = @transform_10, window_bounds = array<i64: 1, 8, 32>}]} {
    %c0_i32 = arith.constant 0 : i32
    %0 = arith.cmpi eq, %arg2, %c0_i32 : i32
    %1 = arith.extui %0 : i1 to i32
    %c0_i32_0 = arith.constant 0 : i32
    %2 = arith.cmpi ne, %1, %c0_i32_0 : i32
    scf.if %2 {
      %c0_29 = arith.constant 0 : index
      %c0_30 = arith.constant 0 : index
      %c0_31 = arith.constant 0 : index
      %44 = vector.load %arg3[%c0_29, %c0_30, %c0_31] : memref<1x8x32xf32, #tpu.memory_space<vmem>>, vector<1x8x32xf32>
      %45 = vector.shape_cast %44 : vector<1x8x32xf32> to vector<8x32xf32>
      %c0_32 = arith.constant 0 : index
      %c0_33 = arith.constant 0 : index
      %46 = vector.load %arg6[%c0_32, %c0_33] : memref<32x16xf32, #tpu.memory_space<vmem>>, vector<32x16xf32>
      %cst_34 = arith.constant dense<0.000000e+00> : vector<8x16xf32>
      %47 = tpu.matmul %45, %46, %cst_34 {dimension_numbers = #tpu.dot_dimension_numbers<[1], [0], [0], [1], [0, 0, 1, 1], [], []>} : vector<8x32xf32>, vector<32x16xf32>, vector<8x16xf32> -> vector<8x16xf32>
      %c0_35 = arith.constant 0 : index
      %c0_36 = arith.constant 0 : index
      %48 = vector.load %arg7[%c0_35, %c0_36] : memref<1x16xf32, #tpu.memory_space<vmem>>, vector<1x16xf32>
      %49 = vector.broadcast %48 : vector<1x16xf32> to vector<8x16xf32>
      %50 = arith.addf %47, %49 : vector<8x16xf32>
      %c0_37 = arith.constant 0 : index
      %c0_38 = arith.constant 0 : index
      %51 = vector.load %arg8[%c0_37, %c0_38] : memref<32x16xf32, #tpu.memory_space<vmem>>, vector<32x16xf32>
      %cst_39 = arith.constant dense<0.000000e+00> : vector<8x16xf32>
      %52 = tpu.matmul %45, %51, %cst_39 {dimension_numbers = #tpu.dot_dimension_numbers<[1], [0], [0], [1], [0, 0, 1, 1], [], []>} : vector<8x32xf32>, vector<32x16xf32>, vector<8x16xf32> -> vector<8x16xf32>
      %c0_40 = arith.constant 0 : index
      %c0_41 = arith.constant 0 : index
      %53 = vector.load %arg9[%c0_40, %c0_41] : memref<1x16xf32, #tpu.memory_space<vmem>>, vector<1x16xf32>
      %54 = vector.broadcast %53 : vector<1x16xf32> to vector<8x16xf32>
      %55 = arith.addf %52, %54 : vector<8x16xf32>
      %56 = tpu.transpose %50, [1, 0] : vector<8x16xf32> -> vector<16x8xf32>
      %c0_42 = arith.constant 0 : index
      %c0_43 = arith.constant 0 : index
      %57 = vector.load %arg14[%c0_42, %c0_43] : memref<16x8xf32, #tpu.memory_space<vmem>>, vector<16x8xf32>
      tpu.vector_store %arg14[%c0_42, %c0_43], %56 {strides = array<i32>} : memref<16x8xf32, #tpu.memory_space<vmem>>, vector<16x8xf32>,
      %c0_44 = arith.constant 0 : index
      %c0_45 = arith.constant 0 : index
      %58 = vector.load %arg15[%c0_44, %c0_45] : memref<8x16xf32, #tpu.memory_space<vmem>>, vector<8x16xf32>
      tpu.vector_store %arg15[%c0_44, %c0_45], %55 {strides = array<i32>} : memref<8x16xf32, #tpu.memory_space<vmem>>, vector<8x16xf32>,
    } else {
    }
    %c1_i32 = arith.constant 1 : i32
    %3 = arith.muli %arg1, %c1_i32 : i32
    %4 = arith.addi %3, %arg2 : i32
    %c8_i32 = arith.constant 8 : i32
    %5 = arith.muli %4, %c8_i32 : i32
    %6 = tpu.assume_multiple %5, 8 : i32
    %c0 = arith.constant 0 : index
    %7 = arith.index_cast %6 : i32 to index
    %c0_1 = arith.constant 0 : index
    %8 = vector.load %arg3[%c0, %7, %c0_1] : memref<1x8x32xf32, #tpu.memory_space<vmem>>, vector<1x8x32xf32>
    %9 = vector.shape_cast %8 : vector<1x8x32xf32> to vector<8x32xf32>
    %c0_2 = arith.constant 0 : index
    %c0_3 = arith.constant 0 : index
    %10 = vector.load %arg4[%c0_2, %c0_3] : memref<32x16xf32, #tpu.memory_space<vmem>>, vector<32x16xf32>
    %cst = arith.constant dense<0.000000e+00> : vector<8x16xf32>
    %11 = tpu.matmul %9, %10, %cst {dimension_numbers = #tpu.dot_dimension_numbers<[1], [0], [0], [1], [0, 0, 1, 1], [], []>} : vector<8x32xf32>, vector<32x16xf32>, vector<8x16xf32> -> vector<8x16xf32>
    %c0_4 = arith.constant 0 : index
    %c0_5 = arith.constant 0 : index
    %12 = vector.load %arg5[%c0_4, %c0_5] : memref<1x16xf32, #tpu.memory_space<vmem>>, vector<1x16xf32>
    %13 = vector.broadcast %12 : vector<1x16xf32> to vector<8x16xf32>
    %14 = arith.addf %11, %13 : vector<8x16xf32>
    %cst_6 = arith.constant 0.176776692 : f32
    %15 = vector.broadcast %cst_6 : f32 to vector<8x16xf32>
    %16 = arith.mulf %14, %15 : vector<8x16xf32>
    %c0_7 = arith.constant 0 : index
    %c0_8 = arith.constant 0 : index
    %17 = vector.load %arg14[%c0_7, %c0_8] : memref<16x8xf32, #tpu.memory_space<vmem>>, vector<16x8xf32>
    %cst_9 = arith.constant dense<0.000000e+00> : vector<8x8xf32>
    %18 = tpu.matmul %16, %17, %cst_9 {dimension_numbers = #tpu.dot_dimension_numbers<[1], [0], [0], [1], [0, 0, 1, 1], [], []>} : vector<8x16xf32>, vector<16x8xf32>, vector<8x8xf32> -> vector<8x8xf32>
    %cst_10 = arith.constant dense<0xFF800000> : vector<8xf32>
    %19 = vector.multi_reduction <maximumf>, %18, %cst_10 [1] : vector<8x8xf32> to vector<8xf32>
    %20 = vector.shape_cast %19 : vector<8xf32> to vector<8x1xf32>
    %21 = vector.broadcast %20 : vector<8x1xf32> to vector<8x8xf32>
    %22 = arith.subf %18, %21 : vector<8x8xf32>
    %23 = math.exp %22 : vector<8x8xf32>
    %cst_11 = arith.constant dense<0.000000e+00> : vector<8xf32>
    %24 = vector.multi_reduction <add>, %23, %cst_11 [1] : vector<8x8xf32> to vector<8xf32>
    %25 = vector.shape_cast %24 : vector<8xf32> to vector<8x1xf32>
    %26 = tpu.reciprocal %25 : vector<8x1xf32> -> vector<8x1xf32>
    %27 = vector.broadcast %26 : vector<8x1xf32> to vector<8x8xf32>
    %28 = arith.mulf %23, %27 : vector<8x8xf32>
    %c0_12 = arith.constant 0 : index
    %c0_13 = arith.constant 0 : index
    %c0_14 = arith.constant 0 : index
    %29 = vector.load %arg12[%c0_12, %c0_13, %c0_14] : memref<1x8x8xf32, #tpu.memory_space<vmem>>, vector<1x8x8xf32>
    %30 = vector.shape_cast %29 : vector<1x8x8xf32> to vector<8x8xf32>
    %31 = vector.shape_cast %28 : vector<8x8xf32> to vector<1x8x8xf32>
    tpu.vector_store %arg12[%c0_12, %c0_13, %c0_14], %31 {strides = array<i32>} : memref<1x8x8xf32, #tpu.memory_space<vmem>>, vector<1x8x8xf32>,
    %c0_15 = arith.constant 0 : index
    %c0_16 = arith.constant 0 : index
    %c0_17 = arith.constant 0 : index
    %32 = vector.load %arg12[%c0_15, %c0_16, %c0_17] : memref<1x8x8xf32, #tpu.memory_space<vmem>>, vector<1x8x8xf32>
    %33 = vector.shape_cast %32 : vector<1x8x8xf32> to vector<8x8xf32>
    %c0_18 = arith.constant 0 : index
    %c0_19 = arith.constant 0 : index
    %34 = vector.load %arg15[%c0_18, %c0_19] : memref<8x16xf32, #tpu.memory_space<vmem>>, vector<8x16xf32>
    %cst_20 = arith.constant dense<0.000000e+00> : vector<8x16xf32>
    %35 = tpu.matmul %33, %34, %cst_20 {dimension_numbers = #tpu.dot_dimension_numbers<[1], [0], [0], [1], [0, 0, 1, 1], [], []>} : vector<8x8xf32>, vector<8x16xf32>, vector<8x16xf32> -> vector<8x16xf32>
    %c0_21 = arith.constant 0 : index
    %c0_22 = arith.constant 0 : index
    %36 = vector.load %arg10[%c0_21, %c0_22] : memref<16x32xf32, #tpu.memory_space<vmem>>, vector<16x32xf32>
    %cst_23 = arith.constant dense<0.000000e+00> : vector<8x32xf32>
    %37 = tpu.matmul %35, %36, %cst_23 {dimension_numbers = #tpu.dot_dimension_numbers<[1], [0], [0], [1], [0, 0, 1, 1], [], []>} : vector<8x16xf32>, vector<16x32xf32>, vector<8x32xf32> -> vector<8x32xf32>
    %c0_24 = arith.constant 0 : index
    %c0_25 = arith.constant 0 : index
    %38 = vector.load %arg11[%c0_24, %c0_25] : memref<1x32xf32, #tpu.memory_space<vmem>>, vector<1x32xf32>
    %39 = vector.broadcast %38 : vector<1x32xf32> to vector<8x32xf32>
    %40 = arith.addf %37, %39 : vector<8x32xf32>
    %c0_26 = arith.constant 0 : index
    %c0_27 = arith.constant 0 : index
    %c0_28 = arith.constant 0 : index
    %41 = vector.load %arg13[%c0_26, %c0_27, %c0_28] : memref<1x8x32xf32, #tpu.memory_space<vmem>>, vector<1x8x32xf32>
    %42 = vector.shape_cast %41 : vector<1x8x32xf32> to vector<8x32xf32>
    %43 = vector.shape_cast %40 : vector<8x32xf32> to vector<1x8x32xf32>
    tpu.vector_store %arg13[%c0_26, %c0_27, %c0_28], %43 {strides = array<i32>} : memref<1x8x32xf32, #tpu.memory_space<vmem>>, vector<1x8x32xf32>,
    return
  }
  func.func @transform_0(%arg0: i32, %arg1: i32, %arg2: i32) -> (i32, i32, i32) {
    %c0_i32 = arith.constant 0 : i32
    %c0_i32_0 = arith.constant 0 : i32
    %c0_i32_1 = arith.constant 0 : i32
    return %arg0, %c0_i32, %c0_i32_0 : i32, i32, i32
  }
  func.func @transform_1(%arg0: i32, %arg1: i32, %arg2: i32) -> (i32, i32) {
    %c0_i32 = arith.constant 0 : i32
    %c0_i32_0 = arith.constant 0 : i32
    %c0_i32_1 = arith.constant 0 : i32
    return %c0_i32, %c0_i32_0 : i32, i32
  }
  func.func @transform_2(%arg0: i32, %arg1: i32, %arg2: i32) -> (i32, i32) {
    %c0_i32 = arith.constant 0 : i32
    %c0_i32_0 = arith.constant 0 : i32
    %c0_i32_1 = arith.constant 0 : i32
    return %c0_i32, %c0_i32_0 : i32, i32
  }
  func.func @transform_3(%arg0: i32, %arg1: i32, %arg2: i32) -> (i32, i32) {
    %c0_i32 = arith.constant 0 : i32
    %c0_i32_0 = arith.constant 0 : i32
    %c0_i32_1 = arith.constant 0 : i32
    return %c0_i32, %c0_i32_0 : i32, i32
  }
  func.func @transform_4(%arg0: i32, %arg1: i32, %arg2: i32) -> (i32, i32) {
    %c0_i32 = arith.constant 0 : i32
    %c0_i32_0 = arith.constant 0 : i32
    %c0_i32_1 = arith.constant 0 : i32
    return %c0_i32, %c0_i32_0 : i32, i32
  }
  func.func @transform_5(%arg0: i32, %arg1: i32, %arg2: i32) -> (i32, i32) {
    %c0_i32 = arith.constant 0 : i32
    %c0_i32_0 = arith.constant 0 : i32
    %c0_i32_1 = arith.constant 0 : i32
    return %c0_i32, %c0_i32_0 : i32, i32
  }
  func.func @transform_6(%arg0: i32, %arg1: i32, %arg2: i32) -> (i32, i32) {
    %c0_i32 = arith.constant 0 : i32
    %c0_i32_0 = arith.constant 0 : i32
    %c0_i32_1 = arith.constant 0 : i32
    return %c0_i32, %c0_i32_0 : i32, i32
  }
  func.func @transform_7(%arg0: i32, %arg1: i32, %arg2: i32) -> (i32, i32) {
    %c0_i32 = arith.constant 0 : i32
    %c0_i32_0 = arith.constant 0 : i32
    %c0_i32_1 = arith.constant 0 : i32
    return %c0_i32, %c0_i32_0 : i32, i32
  }
  func.func @transform_8(%arg0: i32, %arg1: i32, %arg2: i32) -> (i32, i32) {
    %c0_i32 = arith.constant 0 : i32
    %c0_i32_0 = arith.constant 0 : i32
    %c0_i32_1 = arith.constant 0 : i32
    return %c0_i32, %c0_i32_0 : i32, i32
  }
  func.func @transform_9(%arg0: i32, %arg1: i32, %arg2: i32) -> (i32, i32, i32) {
    %c1_i32 = arith.constant 1 : i32
    %0 = arith.muli %arg1, %c1_i32 : i32
    %1 = arith.addi %0, %arg2 : i32
    %c0_i32 = arith.constant 0 : i32
    %c0_i32_0 = arith.constant 0 : i32
    return %arg0, %1, %c0_i32 : i32, i32, i32
  }
  func.func @transform_10(%arg0: i32, %arg1: i32, %arg2: i32) -> (i32, i32, i32) {
    %c1_i32 = arith.constant 1 : i32
    %0 = arith.muli %arg1, %c1_i32 : i32
    %1 = arith.addi %0, %arg2 : i32
    %c0_i32 = arith.constant 0 : i32
    %c0_i32_0 = arith.constant 0 : i32
    return %arg0, %1, %c0_i32 : i32, i32, i32
  }
}

</mosaic_0001>

<bundles_post_ra>
// kernel: tpu_custom_call.1
= control target key start
LH: loop header
LB: loop body
LE: loop exit
PB: predicated region body
PF: predicated region fallthrough
CT: control target
= control target key end

     0   :  { %s2500_s0 = inlined_call_operand.hbm [shape: f32[2,8,32], index: 0, kind: input, shape index: {}]   ;;  %s2501_s1 = inlined_call_operand.hbm [shape: f32[32,16], index: 1, kind: input, shape index: {}]   ;;  %s2502_s2 = inlined_call_operand.hbm [shape: f32[1,16], index: 2, kind: input, shape index: {}]   ;;  %s2503_s3 = inlined_call_operand.hbm [shape: f32[32,16], index: 3, kind: input, shape index: {}]   ;;  %s2504_s4 = inlined_call_operand.hbm [shape: f32[1,16], index: 4, kind: input, shape index: {}]   ;;  %s2505_s5 = inlined_call_operand.hbm [shape: f32[32,16], index: 5, kind: input, shape index: {}]   ;;  %s2506_s6 = inlined_call_operand.hbm [shape: f32[1,16], index: 6, kind: input, shape index: {}]   ;;  %s2507_s7 = inlined_call_operand.hbm [shape: f32[16,32], index: 7, kind: input, shape index: {}]   ;;  %s2508_s8 = inlined_call_operand.hbm [shape: f32[1,32], index: 8, kind: input, shape index: {}]   ;;  %s2509_s9 = inlined_call_operand.hbm [shape: f32[2,8,8], index: 9, kind: output, shape index: {0}]   ;;  %s2510_s10 = inlined_call_operand.hbm [shape: f32[2,8,32], index: 10, kind: output, shape index: {1}]  }
   0x1   :  { %2521 = sst [smem:[#allocation31_spill]] %s2500_s0 }
   0x2   :  { %2522 = sst [smem:[#allocation32_spill]] %s2501_s1 }
   0x3   :  { %2523 = sst [smem:[#allocation33_spill]] %s2509_s9 }
   0x4   :  { %2524 = sst [smem:[#allocation34_spill]] %s2510_s10 }
   0x5   :  { %16 = vsyncpa [#allocation5], 0 }
   0x6   :  { %18 = vsyncpa [#allocation5 + $0x1], 0 }
   0x7   :  { %19 = vsyncpa [#allocation8], 0 }
   0x8   :  { %20 = vsyncpa [#allocation11], 0 }
   0x9   :  { %21 = vsyncpa [#allocation14], 0 }
   0xa   :  { %22 = vsyncpa [#allocation17], 0 }
   0xb   :  { %23 = vsyncpa [#allocation6], 0 }
   0xc   :  { %25 = vsyncpa [#allocation6 + $0x1], 0 }
   0xd   :  { %26 = vsyncpa [#allocation21], 0 }
   0xe   :  { %28 = vsyncpa [#allocation21 + $0x1], 0  ;;  %s2055_s13 = smov 0   ;;  %s2057_s14 = smov 0  }
   0xf   :  { %s2059_s15 = smov 0   ;;  %s2061_s16 = smov 0  }
  0x10   :  { %s2063_s17 = smov 0   ;;  %s2065_s18 = smov 0  }
  0x11 LB: > { %2525 = sst [smem:[#allocation29_spill]] %s1974_s16  ;;  %s2511_s19 = sadd.s32 4294967295, %s1982_s18   ;;  %s1982_s18 = sphi %s2065_s18, %s34_s18   ;;  %s1978_s17 = sphi %s2063_s17, %s2554_s17   ;;  %s1974_s16 = sphi %s2061_s16, %s2553_s16   ;;  %s1970_s15 = sphi %s2059_s15, %s2552_s15   ;;  %s1966_s14 = sphi %s2057_s14, %s2551_s14   ;;  %s1962_s13 = sphi %s2055_s13, %s2550_s13  }
  0x12   : > { %p1302_p0 = scmp.ge.s32.totalorder %s1982_s18, 1  ;;  %p2089_p1 = scmp.eq.s32.totalorder %s2511_s19, 0 }
  0x13   : > { %p312_p2 = scmp.lt.s32.totalorder %s1982_s18, 3  ;;  %s1984_s22 = smov [#allocation7]  }
  0x14   : > { %s2526_s20 = scalar_select %p2089_p1, 1, 0 }
  0x15   : > { %p2094_p3 = pnand %p1302_p0, %p312_p2  ;;  %s324_s23 = sshll.u32 %s1984_s22, 4  ;;  %s2098_s23 = int_to_ptr.vmem [resolvable:$true] %s324_s23 }
  0x16   : > { %s1985_s25 = smov [#allocation10]   ;;  %s1986_s27 = smov [#allocation13]  }
  0x17   : > { %s2527_s21 = scalar_select %p2094_p3, 1, 0 }
  0x18   : > { %p1479_p4 = pneg %p2094_p3  ;;  %s348_s26 = sshll.u32 %s1985_s25, 4  ;;  %s2109_s26 = int_to_ptr.vmem [resolvable:$true] %s348_s26 }
  0x19   : > { %2528 = sst [smem:[#allocation30_spill]] %s2527_s21  ;;  %s2111_s28 = sshll.u32 %s1986_s27, 4  ;;  %s373_s28 = int_to_ptr.vmem [resolvable:$true] %s2111_s28 }
  0x1a   : > { %p2105_p6 = pnand %p1479_p4, %p2089_p1  ;;  %s2530_s1 = sld [smem:[#allocation32_spill]] }
  0x1c   : > { %p2121_p8 = pneg %p2105_p6 }
  0x20   : > { %s1598_s11 = scalar_lea.hbm %s2530_s1, 512 }
  0x21   : > { %p1599_p7 = scmp.ne.s32.totalorder %s2530_s1, %s1598_s11  ;;  %p1605_p11 = scmp.lt.u32.totalorder %s1598_s11, %s2530_s1 }
  0x23   : > { %p1601_p9 = pnand %p2121_p8, %p1599_p7 }
  0x25   : > { %p1602_p10 = pneg %p1601_p9 }
  0x27   : > { %p1607_p12 = pnand %p1605_p11, %p1602_p10 }
  0x29   : > { %1610 = shalt.err (!%p1607_p12)
}
  0x2a   : > { %s1611_s29 = scalar_lea.vmem %s2098_s23, 512  ;;  %p1619_p4 = scmp.lt.s32.totalorder %s2098_s23, %s2098_s23 }
  0x2b   : > { %p1612_p13 = scmp.ne.s32.totalorder %s2098_s23, %s1611_s29  ;;  %p1620_p5 = scmp.lt.s32.totalorder %s1611_s29, %s1611_s29 }
  0x2d   : > { %p1614_p0 = pnand %p1612_p13, %p2121_p8  ;;  %p1621_p7 = por %p1620_p5, %p1619_p4 }
  0x2f   : > { %p1615_p2 = pneg %p1614_p0 }
  0x31   : > { %p1622_p9 = pnand %p1621_p7, %p1615_p2 }
  0x33   : > { %1625 = shalt.err (!%p1622_p9)
}
  0x34   : > { %s1987_s30 = smov 128   ;;  %s1988_s11 = smov 8  }
  0x35   : > { %1482 = dma.hbm_to_vmem [thread:$0]  (!%p2105_p6), %s2530_s1, 512, %s2098_s23, [#allocation8], %s1987_s30, %s1987_s30, %s1988_s11  }
  0x36   : > { %s1626_s29 = scalar_lea.hbm %s2503_s3, 512 }
  0x37   : > { %p1627_p5 = scmp.ne.s32.totalorder %s2503_s3, %s1626_s29  ;;  %p1633_p12 = scmp.lt.u32.totalorder %s1626_s29, %s2503_s3 }
  0x39   : > { %p1629_p10 = pnand %p1627_p5, %p2121_p8 }
  0x3b   : > { %p1630_p11 = pneg %p1629_p10 }
  0x3d   : > { %p1635_p13 = pnand %p1633_p12, %p1630_p11 }
  0x3f   : > { %1638 = shalt.err (!%p1635_p13)
}
  0x40   : > { %s1639_s23 = scalar_lea.vmem %s2109_s26, 512  ;;  %p1647_p7 = scmp.lt.s32.totalorder %s2109_s26, %s2109_s26 }
  0x41   : > { %p1640_p0 = scmp.ne.s32.totalorder %s2109_s26, %s1639_s23  ;;  %p1648_p9 = scmp.lt.s32.totalorder %s1639_s23, %s1639_s23 }
  0x43   : > { %p1642_p2 = pnand %p1640_p0, %p2121_p8  ;;  %p1649_p5 = por %p1648_p9, %p1647_p7 }
  0x45   : > { %p1643_p4 = pneg %p1642_p2 }
  0x47   : > { %p1650_p10 = pnand %p1649_p5, %p1643_p4 }
  0x49   : > { %1653 = shalt.err (!%p1650_p10)
}
  0x4a   : > { %1488 = dma.hbm_to_vmem [thread:$0]  (!%p2105_p6), %s2503_s3, 512, %s2109_s26, [#allocation11], %s1987_s30, %s1987_s30, %s1988_s11  }
  0x4b   : > { %s1654_s12 = scalar_lea.hbm %s2505_s5, 512 }
  0x4c   : > { %p1655_p11 = scmp.ne.s32.totalorder %s2505_s5, %s1654_s12  ;;  %p1661_p0 = scmp.lt.u32.totalorder %s1654_s12, %s2505_s5 }
  0x4e   : > { %p1657_p12 = pnand %p1655_p11, %p2121_p8 }
  0x50   : > { %p1658_p13 = pneg %p1657_p12 }
  0x52   : > { %p1663_p2 = pnand %p1661_p0, %p1658_p13 }
  0x54   : > { %1666 = shalt.err (!%p1663_p2)
}
  0x55   : > { %s1667_s23 = scalar_lea.vmem %s373_s28, 512  ;;  %p1675_p5 = scmp.lt.s32.totalorder %s373_s28, %s373_s28 }
  0x56   : > { %p1668_p4 = scmp.ne.s32.totalorder %s373_s28, %s1667_s23  ;;  %p1676_p10 = scmp.lt.s32.totalorder %s1667_s23, %s1667_s23 }
  0x58   : > { %p1670_p7 = pnand %p1668_p4, %p2121_p8  ;;  %p1677_p3 = por %p1676_p10, %p1675_p5 }
  0x5a   : > { %p1671_p9 = pneg %p1670_p7 }
  0x5c   : > { %p1678_p1 = pnand %p1677_p3, %p1671_p9 }
  0x5e   : > { %1681 = shalt.err (!%p1678_p1)
}
  0x5f   : > { %1494 = dma.hbm_to_vmem [thread:$0]  (!%p2105_p6), %s2505_s5, 512, %s373_s28, [#allocation14], %s1987_s30, %s1987_s30, %s1988_s11  }
  0x60   : > { %s1989_s10 = smov [#allocation16]   ;;  %s1990_s21 = smov [#allocation9]  }
  0x61   : > { %s396_s16 = sshll.u32 %s1989_s10, 4  ;;  %s338_s12 = sshll.u32 %s1990_s21, 4  ;;  %s397_s16 = int_to_ptr.vmem [resolvable:$true] %s396_s16  ;;  %s339_s12 = int_to_ptr.vmem [resolvable:$true] %s338_s12 }
  0x62   : > { %s1682_s27 = scalar_lea.hbm %s2507_s7, 256 }
  0x63   : > { %p1683_p1 = scmp.ne.s32.totalorder %s2507_s7, %s1682_s27  ;;  %p1689_p12 = scmp.lt.u32.totalorder %s1682_s27, %s2507_s7 }
  0x65   : > { %p1685_p3 = pnand %p1683_p1, %p2121_p8 }
  0x67   : > { %p1686_p11 = pneg %p1685_p3 }
  0x69   : > { %p1691_p13 = pnand %p1689_p12, %p1686_p11 }
  0x6b   : > { %1694 = shalt.err (!%p1691_p13)
}
  0x6c   : > { %s1695_s28 = scalar_lea.vmem %s397_s16, 256  ;;  %p1703_p7 = scmp.lt.s32.totalorder %s397_s16, %s397_s16 }
  0x6d   : > { %p1696_p0 = scmp.ne.s32.totalorder %s397_s16, %s1695_s28  ;;  %p1704_p9 = scmp.lt.s32.totalorder %s1695_s28, %s1695_s28 }
  0x6f   : > { %p1698_p2 = pnand %p1696_p0, %p2121_p8  ;;  %p1705_p5 = por %p1704_p9, %p1703_p7 }
  0x71   : > { %p1699_p4 = pneg %p1698_p2 }
  0x73   : > { %p1706_p10 = pnand %p1705_p5, %p1699_p4 }
  0x75   : > { %1709 = shalt.err (!%p1706_p10)
}
  0x76   : > { %1500 = dma.hbm_to_vmem [thread:$0]  (!%p2105_p6), %s2507_s7, 256, %s397_s16, [#allocation17], %s1987_s30, %s1987_s30, %s1988_s11  }
  0x77   : > { %s1710_s22 = scalar_lea.hbm %s2502_s2, 16 }
  0x78   : > { %p1711_p1 = scmp.ne.s32.totalorder %s2502_s2, %s1710_s22  ;;  %p1717_p12 = scmp.lt.u32.totalorder %s1710_s22, %s2502_s2 }
  0x7a   : > { %p1713_p3 = pnand %p1711_p1, %p2121_p8 }
  0x7c   : > { %p1714_p11 = pneg %p1713_p3 }
  0x7e   : > { %p1719_p13 = pnand %p1717_p12, %p1714_p11 }
  0x80   : > { %1722 = shalt.err (!%p1719_p13)
}
  0x81   : > { %s1723_s26 = scalar_lea.vmem %s339_s12, 16  ;;  %s1730_s30 = scalar_lea.vmem %s339_s12, 32 }
  0x82   : > { %p1724_p0 = scmp.ne.s32.totalorder %s339_s12, %s1723_s26  ;;  %p1731_p7 = scmp.lt.s32.totalorder %s339_s12, %s339_s12 }
  0x83   : > { %p1732_p9 = scmp.lt.s32.totalorder %s1730_s30, %s1723_s26 }
  0x84   : > { %p1726_p2 = pnand %p1724_p0, %p2121_p8 }
  0x85   : > { %p1733_p5 = por %p1732_p9, %p1731_p7 }
  0x86   : > { %p1727_p4 = pneg %p1726_p2 }
  0x88   : > { %p1734_p10 = pnand %p1733_p5, %p1727_p4 }
  0x8a   : > { %1737 = shalt.err (!%p1734_p10)
}
  0x8b   : > { %1485 = dma.hbm_to_vmem [thread:$0]  (!%p2105_p6), %s2502_s2, 16, %s339_s12, [#allocation8]  }
  0x8c   : > { %s1991_s28 = smov [#allocation12]   ;;  %s1992_s9 = smov [#allocation15]  }
  0x8d   : > { %s362_s1 = sshll.u32 %s1991_s28, 4  ;;  %s386_s10 = sshll.u32 %s1992_s9, 4  ;;  %s363_s1 = int_to_ptr.vmem [resolvable:$true] %s362_s1  ;;  %s387_s10 = int_to_ptr.vmem [resolvable:$true] %s386_s10 }
  0x8e   : > { %s1738_s25 = scalar_lea.hbm %s2504_s4, 16 }
  0x8f   : > { %p1739_p1 = scmp.ne.s32.totalorder %s2504_s4, %s1738_s25  ;;  %p1745_p12 = scmp.lt.u32.totalorder %s1738_s25, %s2504_s4 }
  0x91   : > { %p1741_p3 = pnand %p1739_p1, %p2121_p8 }
  0x93   : > { %p1742_p11 = pneg %p1741_p3 }
  0x95   : > { %p1747_p13 = pnand %p1745_p12, %p1742_p11 }
  0x97   : > { %1750 = shalt.err (!%p1747_p13)
}
  0x98   : > { %s1751_s12 = scalar_lea.vmem %s363_s1, 16  ;;  %s1758_s30 = scalar_lea.vmem %s363_s1, 32 }
  0x99   : > { %p1752_p0 = scmp.ne.s32.totalorder %s363_s1, %s1751_s12  ;;  %p1759_p7 = scmp.lt.s32.totalorder %s363_s1, %s363_s1 }
  0x9a   : > { %p1760_p9 = scmp.lt.s32.totalorder %s1758_s30, %s1751_s12 }
  0x9b   : > { %p1754_p2 = pnand %p1752_p0, %p2121_p8 }
  0x9c   : > { %p1761_p5 = por %p1760_p9, %p1759_p7 }
  0x9d   : > { %p1755_p4 = pneg %p1754_p2 }
  0x9f   : > { %p1762_p10 = pnand %p1761_p5, %p1755_p4 }
  0xa1   : > { %1765 = shalt.err (!%p1762_p10)
}
  0xa2   : > { %1491 = dma.hbm_to_vmem [thread:$0]  (!%p2105_p6), %s2504_s4, 16, %s363_s1, [#allocation11]  }
  0xa3   : > { %s1766_s21 = scalar_lea.hbm %s2506_s6, 16 }
  0xa4   : > { %p1767_p1 = scmp.ne.s32.totalorder %s2506_s6, %s1766_s21  ;;  %p1773_p12 = scmp.lt.u32.totalorder %s1766_s21, %s2506_s6 }
  0xa6   : > { %p1769_p3 = pnand %p1767_p1, %p2121_p8 }
  0xa8   : > { %p1770_p11 = pneg %p1769_p3 }
  0xaa   : > { %p1775_p13 = pnand %p1773_p12, %p1770_p11 }
  0xac   : > { %1778 = shalt.err (!%p1775_p13)
}
  0xad   : > { %s1779_s23 = scalar_lea.vmem %s387_s10, 16  ;;  %s1786_s1 = scalar_lea.vmem %s387_s10, 32 }
  0xae   : > { %p1780_p0 = scmp.ne.s32.totalorder %s387_s10, %s1779_s23  ;;  %p1787_p7 = scmp.lt.s32.totalorder %s387_s10, %s387_s10 }
  0xaf   : > { %p1788_p9 = scmp.lt.s32.totalorder %s1786_s1, %s1779_s23 }
  0xb0   : > { %p1782_p2 = pnand %p1780_p0, %p2121_p8 }
  0xb1   : > { %p1789_p5 = por %p1788_p9, %p1787_p7 }
  0xb2   : > { %p1783_p4 = pneg %p1782_p2 }
  0xb4   : > { %p1790_p10 = pnand %p1789_p5, %p1783_p4 }
  0xb6   : > { %1793 = shalt.err (!%p1790_p10)
}
  0xb7   : > { %1497 = dma.hbm_to_vmem [thread:$0]  (!%p2105_p6), %s2506_s6, 16, %s387_s10, [#allocation14]  }
  0xb8   : > { %s1993_s30 = smov [#allocation18]   ;;  %s1794_s9 = scalar_lea.hbm %s2508_s8, 16 }
  0xb9   : > { %s410_s11 = sshll.u32 %s1993_s30, 4  ;;  %p1795_p1 = scmp.ne.s32.totalorder %s2508_s8, %s1794_s9  ;;  %s411_s11 = int_to_ptr.vmem [resolvable:$true] %s410_s11 }
  0xba   : > { %p1801_p12 = scmp.lt.u32.totalorder %s1794_s9, %s2508_s8 }
  0xbb   : > { %p1797_p3 = pnand %p1795_p1, %p2121_p8 }
  0xbd   : > { %p1798_p11 = pneg %p1797_p3 }
  0xbf   : > { %p1803_p13 = pnand %p1801_p12, %p1798_p11 }
  0xc1   : > { %1806 = shalt.err (!%p1803_p13)
}
  0xc2   : > { %s1807_s10 = scalar_lea.vmem %s411_s11, 16  ;;  %s1814_s29 = scalar_lea.vmem %s411_s11, 32 }
  0xc3   : > { %p1808_p0 = scmp.ne.s32.totalorder %s411_s11, %s1807_s10  ;;  %p1815_p7 = scmp.lt.s32.totalorder %s411_s11, %s411_s11 }
  0xc4   : > { %p1816_p9 = scmp.lt.s32.totalorder %s1814_s29, %s1807_s10 }
  0xc5   : > { %p1810_p2 = pnand %p1808_p0, %p2121_p8 }
  0xc6   : > { %p1817_p5 = por %p1816_p9, %p1815_p7 }
  0xc7   : > { %p1811_p4 = pneg %p1810_p2 }
  0xc9   : > { %p1818_p10 = pnand %p1817_p5, %p1811_p4 }
  0xcb   : > { %1821 = shalt.err (!%p1818_p10)
}
  0xcc   : > { %1503 = dma.hbm_to_vmem [thread:$0]  (!%p2105_p6), %s2508_s8, 16, %s411_s11, [#allocation17]  }
  0xcd   : > { %s1301_s19 = sadd.s32 4294967294, %s1982_s18   ;;  %s53_s26 = sadd.s32 1, %s1978_s17 }
  0xce   : > { %p55_p8 = scmp.ge.s32.totalorder %s53_s26, 2  ;;  %s60_s24 = sadd.s32 1, %s1970_s15 }
  0xcf   : > { %p67_p1 = scmp.ne.s32.totalorder %s1970_s15, %s1966_s14  ;;  %p68_p3 = scmp.eq.s32.totalorder %s1982_s18, 0 }
  0xd0   : > { %s2556_s26 = smov (%p55_p8, %s53_s26), 0  ;;  %p73_p12 = scmp.ne.s32.totalorder %s1966_s14, %s1962_s13 }
  0xd1   : > { %p2294_p11 = por %p68_p3, %p67_p1  ;;  %s57_s30 = ssub.s32 %s1978_s17, %s2556_s26 }
  0xd2   : > { %s2533_s11 = sadd.s32 4294967295, %s1982_s18   ;;  %p58_p13 = scmp.eq.s32.totalorder %s57_s30, 0 }
  0xd3   : > { %p269_p6 = scmp.eq.s32.totalorder %s2533_s11, 1  ;;  %p2534_p0 = scmp.ne.s32.totalorder %s2526_s20, 0 }
  0xd4   : > { %p275_p7 = scmp.eq.s32.totalorder %s1301_s19, 1  ;;  %p1523_p5 = scmp.lt.s32.totalorder %s1982_s18, 2 }
  0xd5   : > { %p2306_p2 = por %p2534_p0, %p73_p12  ;;  %p2310_p4 = por %p269_p6, %p67_p1 }
  0xd6   : > { %s2315_s9 = scalar_select %p58_p13, %s1970_s15, %s60_s24  }
  0xd7   : > { %s2536_s28 = scalar_select %p2310_p4, 1, 0 }
  0xd8   : > { %p2317_p9 = por %p275_p7, %p73_p12  ;;  %s421_s22 = sand.u32 1, %s1970_s15  }
  0xd9   : > { %s1313_s25 = sshll.u32 %s1978_s17, 7  ;;  %s1312_s27 = sshll.u32 %s421_s22, 3 }
  0xda   : > { %s2537_s21 = scalar_select %p2317_p9, 1, 0 }
  0xdb   : > { %s2538_s0 = sld [smem:[#allocation31_spill]]  ;;  %s425_s1 = scalar_lea.vmem [#allocation4], %s1312_s27 }
  0xdc   : > { %s432_s19 = sshll.u32 %s425_s1, 4  ;;  %p2331_p10 = pnand %p1523_p5, %p2294_p11  ;;  %s2335_s19 = int_to_ptr.vmem [resolvable:$true] %s432_s19 }
  0xdd   : > { %s422_s30 = scalar_lea.sflag [#allocation5], %s421_s22 }
  0xde   : > { %p1824_p1 = pneg %p2331_p10 }
  0xe1   : > { %s2327_s23 = scalar_lea.hbm %s2538_s0, %s1313_s25  ;;  %s1827_s12 = scalar_lea.hbm %s2538_s0, 256 }
  0xe2   : > { %s1822_s11 = scalar_lea.hbm %s2327_s23, 128  ;;  %p1828_p11 = scmp.lt.u32.totalorder %s2327_s23, %s2538_s0 }
  0xe3   : > { %p1823_p8 = scmp.ne.s32.totalorder %s2327_s23, %s1822_s11  ;;  %p1829_p6 = scmp.lt.u32.totalorder %s1827_s12, %s1822_s11 }
  0xe4   : > { %p1831_p0 = scmp.lt.u32.totalorder %s1822_s11, %s2327_s23 }
  0xe5   : > { %p1825_p3 = pnand %p1824_p1, %p1823_p8  ;;  %p1830_p13 = por %p1829_p6, %p1828_p11 }
  0xe7   : > { %p1826_p12 = pneg %p1825_p3  ;;  %p1832_p7 = por %p1831_p0, %p1830_p13 }
  0xe9   : > { %p1833_p5 = pnand %p1832_p7, %p1826_p12 }
  0xeb   : > { %1836 = shalt.err (!%p1833_p5)
}
  0xec   : > { %s1837_s22 = scalar_lea.vmem %s2335_s19, 128  ;;  %s1994_s1 = smov [#allocation4]  }
  0xed   : > { %p1838_p8 = scmp.ne.s32.totalorder %s2335_s19, %s1837_s22  ;;  %s1842_s25 = sshll.u32 %s1994_s1, 4  ;;  %s1843_s25 = int_to_ptr.vmem [resolvable:$false] %s1842_s25 }
  0xee   : > { %s1844_s27 = scalar_lea.vmem %s1843_s25, 256  ;;  %p1845_p4 = scmp.lt.s32.totalorder %s2335_s19, %s1843_s25 }
  0xef   : > { %p1840_p3 = pnand %p1838_p8, %p1824_p1  ;;  %p1846_p11 = scmp.lt.s32.totalorder %s1844_s27, %s1837_s22 }
  0xf1   : > { %p1841_p9 = pneg %p1840_p3  ;;  %p1847_p6 = por %p1846_p11, %p1845_p4 }
  0xf3   : > { %p1848_p13 = pnand %p1847_p6, %p1841_p9 }
  0xf5   : > { %1851 = shalt.err (!%p1848_p13)
}
  0xf6   : > { %1507 = dma.hbm_to_vmem [thread:$0]  (!%p2331_p10), %s2327_s23, 128, %s2335_s19, %s422_s30  }
  0xf7   : > { %s2540_s11 = sld [smem:[#allocation30_spill]] }
  0xfd   : > { %p2541_p12 = scmp.ne.s32.totalorder %s2540_s11, 0 }
  0xfe   : > { %s2365_s12 = sand.u32 (!%p2541_p12), 1, %s1966_s14  }
  0xff   : > { %441 = sbr.rel (%p2541_p12) target bundleno = 1617 (0x651), region = 56  ;;  %s2368_s10 = sshll.u32 (!%p2541_p12), %s2365_s12, 3 }
 0x100   : > { %s444_s29 = scalar_lea.sflag (!%p2541_p12), [#allocation5], %s2365_s12  ;;  %s447_s22 = scalar_lea.vmem (!%p2541_p12), [#allocation4], %s2368_s10 }
 0x106   : > { %1933 = dma.done.wait (%p2306_p2), %s444_s29, 128  }
 0x107   : > { %1935 = vsyncadd (%p2306_p2), %s444_s29, 4294967168  ;;  %p2542_p4 = scmp.ne.s32.totalorder %s2526_s20, 0 }
 0x109   : > { %1937 = dma.done.wait (%p2542_p4), [#allocation8], 528  }
 0x10a   : > { %1939 = vsyncadd (%p2542_p4), [#allocation8], 4294966768 }
 0x10b   : > { %1941 = dma.done.wait (%p2542_p4), [#allocation11], 528  }
 0x10c   : > { %1943 = vsyncadd (%p2542_p4), [#allocation11], 4294966768 }
 0x10d   : > { %1945 = dma.done.wait (%p2542_p4), [#allocation14], 528  }
 0x10e   : > { %1947 = vsyncadd (%p2542_p4), [#allocation14], 4294966768 }
 0x10f   : > { %1949 = dma.done.wait (%p2542_p4), [#allocation17], 272  }
 0x110   : > { %1951 = vsyncadd (%p2542_p4), [#allocation17], 4294967024  ;;  %v1995_v0 = vmov 0.0|0.0   ;;  %vm1996_vm0 = vmmov 0   ;;  %v1997_v1 = vmov 0.0   ;;  %v528_v2 = vld [vmem:[#allocation10] sm:$0xff] }
 0x111   : > { %1417 = vmatprep.subr.bf16.mxu0 %v1995_v0  ;;  %1373 = vmatprep.mubr.msk.f32.mxu0 %vm1996_vm0, %v1997_v1  ;;  %v529_v3 = vld [vmem:[#allocation10 + $0x8] sm:$0xff]  ;;  %v530_v4 = vld [vmem:[#allocation10 + $0x10] sm:$0xff]  ;;  %v531_v6 = vld [vmem:[#allocation10 + $0x18] sm:$0xff]  ;;  %vm539_vm1 = vcmask 261120   ;;  %vm726_vm2 = vcmask 64512   ;;  %vm729_vm3 = vcmask 130048  }
 0x112   : > { %1423 = vmatprep.subr.bf16.mxu1 %v1995_v0  ;;  %1384 = vmatprep.mubr.msk.f32.mxu1 %vm1996_vm0, %v1997_v1  ;;  %v1418_v5 = vpack.c.bf16 %v529_v3, %v528_v2  ;;  %v1421_v7 = vpack.c.bf16 %v531_v6, %v530_v4  ;;  %v735_v8 = vld [vmem:[#allocation7] sm:$0xff]  ;;  %v736_v9 = vld [vmem:[#allocation7 + $0x8] sm:$0xff]  ;;  %v527_v10 = vld [vmem:[%s447_s22] sm:$0xff]  ;;  %s2543_s20 = sld [smem:[#allocation29_spill]]  ;;  %s513_s16 = scalar_lea.vmem [#allocation19], %s2368_s10 }
 0x113   : > { %v1430_v11 = vpack.c.bf16 %v736_v9, %v735_v8  ;;  %v737_v12 = vld [vmem:[#allocation7 + $0x10] sm:$0xff]  ;;  %v738_v13 = vld [vmem:[#allocation7 + $0x18] sm:$0xff]  ;;  %v1326_v15 = vld [vmem:[#allocation12] ss:$0 sm:$0xff]  ;;  %s2544_s30 = sld [smem:[#allocation33_spill]]  ;;  %s1089_s25 = sshll.u32 %s513_s16, 4  ;;  %s1090_s25 = int_to_ptr.vmem [resolvable:$true] %s1089_s25 }
 0x114   : > { %1419 = vmatpush3.bf16.msra.mxu0 %v1418_v5  ;;  %v1433_v14 = vpack.c.bf16 %v738_v13, %v737_v12  ;;  %v613_v19 = vld [vmem:[#allocation13] sm:$0xff]  ;;  %v614_v20 = vld [vmem:[#allocation13 + $0x8] sm:$0xff]  ;;  %v615_v22 = vld [vmem:[#allocation13 + $0x10] sm:$0xff]  ;;  %s1069_s27 = scalar_lea.sflag [#allocation6], %s2365_s12  ;;  %s1852_s11 = scalar_lea.vmem %s1090_s25, 128 }
 0x115   : > { %1420 = vmatprep.subr.bf16.mxu0 %v1995_v0  ;;  %v1424_v21 = vpack.c.bf16 %v614_v20, %v613_v19  ;;  %v616_v23 = vld [vmem:[#allocation13 + $0x18] sm:$0xff]  ;;  %v1328_v35 = vld [vmem:[#allocation15] ss:$0 sm:$0xff]  ;;  %v985_v48 = vld [vmem:[#allocation16] sm:$0xff]  ;;  %p1853_p2 = scmp.ne.s32.totalorder %s1090_s25, %s1852_s11  ;;  %p2545_p9 = scmp.ne.s32.totalorder %s2536_s28, 0 }
 0x116   : > { %v1427_v25 = vpack.c.bf16 %v616_v23, %v615_v22  ;;  %v1330_v29 = vld [vmem:[#allocation9] ss:$0 sm:$0xff]  ;;  %v986_v49 = vld [vmem:[#allocation16 + $0x8] sm:$0xff]  ;;  %s1998_s29 = smov [#allocation19]  }
 0x117   : > { %1425 = vmatpush3.bf16.msra.mxu1 %v1424_v21  ;;  %v1439_v50 = vpack.c.bf16 %v986_v49, %v985_v48  ;;  %p1854_p10 = pnand %p1853_p2, %p2545_p9  ;;  %s1856_s22 = sshll.u32 %s1998_s29, 4  ;;  %s1857_s22 = int_to_ptr.vmem [resolvable:$false] %s1856_s22 }
 0x118   : > { %1422 = vmatpush3.bf16.msra.mxu0 %v1421_v7  ;;  %1426 = vmatprep.subr.bf16.mxu1 %v1995_v0  ;;  %s2520_s23 = sshll.u32 %s2543_s20, 7  ;;  %s1858_s0 = scalar_lea.vmem %s1857_s22, 256 }
 0x119   : > { %1429 = vmatprep.subr.bf16.mxu0 %v1995_v0  ;;  %s2424_s1 = scalar_lea.hbm %s2544_s30, %s2520_s23  ;;  %p1855_p1 = pneg %p1854_p10 }
 0x11a   : > { %p1859_p0 = scmp.lt.s32.totalorder %s1090_s25, %s1857_s22  ;;  %p1860_p7 = scmp.lt.s32.totalorder %s1858_s0, %s1852_s11 }
 0x11b   : > { %1374 = vmatmul.mubr.msk.f32.vlgmr.msra.gmra.mrb[0].mxu0 %vm539_vm1, %v527_v10  ;;  %1428 = vmatpush3.bf16.msra.mxu1 %v1427_v25 }
 0x11c   : > { %1431 = vmatpush3.bf16.msra.mxu0 %v1430_v11  ;;  %1395 = vmatprep.mubr.msk.f32.mxu0 %vm1996_vm0, %v1997_v1  ;;  %p1861_p5 = por %p1860_p7, %p1859_p0 }
 0x11d   : > { %1432 = vmatprep.subr.bf16.mxu0 %v1995_v0  ;;  %1435 = vmatprep.subr.bf16.mxu1 %v1995_v0 }
 0x11e   : > { %1385 = vmatmul.mubr.msk.f32.vlgmr.msra.gmra.mrb[0].mxu1 %vm539_vm1, %v527_v10  ;;  %p1862_p8 = pnand %p1861_p5, %p1855_p1 }
 0x11f   : > { %1402 = vmatprep.mubr.msk.f32.mxu1 %vm1996_vm0, %v1997_v1 }
 0x120   : > { %1434 = vmatpush3.bf16.msra.mxu0 %v1433_v14 }
 0x121   : > { %1438 = vmatprep.subr.bf16.mxu0 %v1995_v0 }
 0x123   : > { %1396 = vmatmul.mubr.msk.f32.vlgmr.msra.gmra.mrb[2].mxu0 %vm539_vm1, %v527_v10 }
 0x124   : > { %1414 = vmatprep.mubr.msk.f32.mxu0 %vm1996_vm0, %v1997_v1  ;;  %1440 = vmatpush3.bf16.msra.mxu0 %v1439_v50 }
 0x1ee   : > { %v609_v16 = vpop.f32.mrb[0].mxu0 }
 0x1ef   : > { %v1375_v17 = vpop.f32.mrb[1].mxu0  ;;  %v610_v18 = vadd.f32 %v1326_v15, %v609_v16 }
 0x1f1   : > { %694 = vxpose.xlu0.b32.start.end [1/1] (short) (narrow) %v610_v18, 16  ;;  %v690_v36 = vpop.f32.mrb[0].mxu1 }
 0x1f2   : > { %v691_v37 = vadd.f32 %v1328_v35, %v690_v36  ;;  %v1386_v38 = vpop.f32.mrb[1].mxu1 }
 0x1f4   : > { %730 = vst.msk [vmem:[#allocation3] sm:$0xff] %vm729_vm3, %v691_v37 }
 0x1f6   : > { %v816_v24 = vpop.f32.mrb[2].mxu0 }
 0x1f7   : > { %v1397_v26 = vpop.f32.mrb[3].mxu0  ;;  %v817_v30 = vadd.f32 %v1330_v29, %v816_v24 }
 0x1f9   : > { %v820_v34 = vmul.f32 0.17677669, %v817_v30 }
 0x1fb   : > { %v911_v39 = vld [vmem:[#allocation3] sm:$0xff] }
 0x271   : > { %v710_v27 = vpop.trf.xlu0 }
 0x272   : > { %727 = vst.msk [vmem:[#allocation2] sm:$0xff] %vm726_vm2, %v710_v27 }
 0x275   : > { %v711_v28 = vpop.trf.xlu0 }
 0x276   : > { %728 = vst.msk [vmem:[#allocation2 + $0x8] sm:$0xff] %vm726_vm2, %v711_v28 }
 0x279   : > { %v821_v31 = vld [vmem:[#allocation2] sm:$0xff] }
 0x27d   : > { %v822_v32 = vld [vmem:[#allocation2 + $0x8] sm:$0xff] }
 0x27e   : > { %v1436_v33 = vpack.c.bf16 %v822_v32, %v821_v31 }
 0x280   : > { %1437 = vmatpush3.bf16.msra.mxu1 %v1436_v33 }
 0x281   : > { %1405 = vmatprep.subr.mxu1 %v1997_v1 }
 0x283   : > { %1403 = vmatmul.mubr.msk.f32.vlgmr.msra.gmra.mrb[2].mxu1 %vm729_vm3, %v820_v34 }
 0x284   : > { %1407 = vmatprep.mubr.msk.f32.mxu1 %vm1996_vm0, %v1997_v1  ;;  %1406 = vmatpush3.msra.mxu1 %v911_v39 }
 0x356   : > { %v893_v40 = vpop.f32.mrb[2].mxu1 }
 0x357   : > { %v1404_v41 = vpop.f32.mrb[3].mxu1  ;;  %v898_v42 = vsel %vm726_vm2, %v893_v40, -inf }
 0x358   : > { %899 = vmax.xlane.f32.xlu0 %v898_v42 }
 0x3e5   : > { %v900_v43 = vpop.xlane.xlu0 %899 }
 0x3e6   : > { %v901_v44 = vsub.f32 %v893_v40, %v900_v43 }
 0x3e8   : > { %v902_v45 = vmul.f32 1.442695, %v901_v44 }
 0x3ea   : > { %1594 = vpow2.f32 %v902_v45 }
 0x3f4   : > { %v1595_v46 = vpop.eup %1594 }
 0x3f5   : > { %v904_v47 = vsel %vm726_vm2, %v1595_v46, 0.0 }
 0x3f6   : > { %905 = vadd.xlane.f32.xlu1 %v904_v47 }
 0x483   : > { %v906_v51 = vpop.xlane.xlu1 %905 }
 0x484   : > { %1596 = vrcp.f32 %v906_v51 }
 0x48e   : > { %v1597_v52 = vpop.eup %1596 }
 0x48f   : > { %v908_v53 = vmul.f32 %v1597_v52, %v1595_v46 }
 0x491   : > { %909 = vst.msk [vmem:[%s513_s16] sm:$0xff] %vm726_vm2, %v908_v53 }
 0x498   : > { %v910_v54 = vld [vmem:[%s513_s16] sm:$0xff] }
 0x499   : > { %1408 = vmatmul.mubr.msk.f32.vlgmr.msra.gmra.mrb[4].mxu1 %vm726_vm2, %v910_v54 }
 0x56c   : > { %v981_v55 = vpop.f32.mrb[4].mxu1 }
 0x56d   : > { %v1409_v56 = vpop.f32.mrb[5].mxu1  ;;  %1415 = vmatmul.mubr.msk.f32.vlgmr.msra.gmra.mrb[4].mxu0 %vm729_vm3, %v981_v55 }
 0x56e   : > { %1865 = shalt.err (!%p1862_p8)
}
 0x56f   : > { %s1866_s16 = scalar_lea.hbm %s2424_s1, 128  ;;  %s1870_s29 = scalar_lea.hbm %s2544_s30, 256 }
 0x570   : > { %p1867_p3 = scmp.ne.s32.totalorder %s2424_s1, %s1866_s16  ;;  %p1871_p13 = scmp.lt.u32.totalorder %s2424_s1, %s2544_s30 }
 0x571   : > { %p1872_p12 = scmp.lt.u32.totalorder %s1870_s29, %s1866_s16  ;;  %p1874_p2 = scmp.lt.u32.totalorder %s1866_s16, %s2424_s1 }
 0x572   : > { %p1868_p11 = pnand %p1867_p3, %p2545_p9 }
 0x573   : > { %p1873_p4 = por %p1872_p12, %p1871_p13 }
 0x574   : > { %p1869_p6 = pneg %p1868_p11 }
 0x575   : > { %p1875_p10 = por %p1874_p2, %p1873_p4 }
 0x577   : > { %p1876_p1 = pnand %p1875_p10, %p1869_p6 }
 0x579   : > { %1879 = shalt.err (!%p1876_p1)
}
 0x57a   : > { %1475 = dma.vmem_to_hbm [thread:$0]  (%p2545_p9), %s1090_s25, 128, %s2424_s1, %s1069_s27   ;;  %v1334_v57 = vld [vmem:[#allocation18] ss:$0 sm:$0xff] }
 0x57b   : > { %s520_s0 = scalar_lea.vmem [#allocation20], %s2368_s10  ;;  %s2546_s23 = sshll.u32 %s2543_s20, 7 }
 0x57c   : > { %s1104_s11 = sshll.u32 %s520_s0, 4  ;;  %s2547_s24 = sld [smem:[#allocation34_spill]]  ;;  %s2452_s11 = int_to_ptr.vmem [resolvable:$true] %s1104_s11 }
 0x57d   : > { %s1074_s1 = scalar_lea.sflag [#allocation21], %s2365_s12  ;;  %s1880_s25 = scalar_lea.vmem %s2452_s11, 128 }
 0x57e   : > { %p1881_p0 = scmp.ne.s32.totalorder %s2452_s11, %s1880_s25  ;;  %s1999_s10 = smov [#allocation20]  }
 0x57f   : > { %s1884_s20 = sshll.u32 %s1999_s10, 4  ;;  %s1885_s20 = int_to_ptr.vmem [resolvable:$false] %s1884_s20 }
 0x580   : > { %p1882_p7 = pnand %p1881_p0, %p2545_p9  ;;  %s1886_s27 = scalar_lea.vmem %s1885_s20, 256 }
 0x581   : > { %p1887_p8 = scmp.lt.s32.totalorder %s2452_s11, %s1885_s20  ;;  %p1888_p3 = scmp.lt.s32.totalorder %s1886_s27, %s1880_s25 }
 0x582   : > { %s2450_s29 = scalar_lea.hbm %s2547_s24, %s2546_s23  ;;  %p1883_p5 = pneg %p1882_p7 }
 0x583   : > { %p1889_p11 = por %p1888_p3, %p1887_p8 }
 0x585   : > { %p1890_p6 = pnand %p1889_p11, %p1883_p5 }
 0x640   : > { %v1063_v58 = vpop.f32.mrb[4].mxu0 }
 0x641   : > { %v1064_v59 = vadd.f32 %v1334_v57, %v1063_v58  ;;  %v1416_v60 = vpop.f32.mrb[5].mxu0 }
 0x643   : > { %1067 = vst.msk [vmem:[%s520_s0] sm:$0xff] %vm539_vm1, %v1064_v59 }
 0x644   : > { %1893 = shalt.err (!%p1890_p6)
}
 0x645   : > { %s1894_s12 = scalar_lea.hbm %s2450_s29, 128  ;;  %s1898_s23 = scalar_lea.hbm %s2547_s24, 256 }
 0x646   : > { %p1895_p13 = scmp.ne.s32.totalorder %s2450_s29, %s1894_s12  ;;  %p1899_p2 = scmp.lt.u32.totalorder %s2450_s29, %s2547_s24 }
 0x647   : > { %p1900_p10 = scmp.lt.u32.totalorder %s1898_s23, %s1894_s12  ;;  %p1902_p0 = scmp.lt.u32.totalorder %s1894_s12, %s2450_s29 }
 0x648   : > { %p1896_p12 = pnand %p1895_p13, %p2545_p9 }
 0x649   : > { %p1901_p1 = por %p1900_p10, %p1899_p2 }
 0x64a   : > { %p1897_p4 = pneg %p1896_p12 }
 0x64b   : > { %p1903_p7 = por %p1902_p0, %p1901_p1 }
 0x64d   : > { %p1904_p5 = pnand %p1903_p7, %p1897_p4 }
 0x64f   : > { %1907 = shalt.err (!%p1904_p5)
}
 0x650   : > { %1476 = dma.vmem_to_hbm [thread:$0]  (%p2545_p9), %s2452_s11, 128, %s2450_s29, %s1074_s1  }
 0x651 PF: > { %s1116_s25 = sand.u32 1, %s1962_s13   ;;  %p2548_p8 = scmp.ne.s32.totalorder %s2537_s21, 0 }
 0x652   : > { %p2549_p3 = scmp.ge.s32.totalorder %s1982_s18, 2  ;;  %s1117_s10 = scalar_lea.sflag [#allocation6], %s1116_s25 }
 0x654   : > { %p1509_p11 = pnand %p2549_p3, %p2548_p8 }
 0x656   : > { %1953 = dma.done.wait (!%p1509_p11), %s1117_s10, 128  }
 0x657   : > { %1955 = vsyncadd (!%p1509_p11), %s1117_s10, 4294967168  ;;  %s1126_s20 = scalar_lea.sflag [#allocation21], %s1116_s25 }
 0x658   : > { %1957 = dma.done.wait (!%p1509_p11), %s1126_s20, 128  }
 0x659   : > { %1959 = vsyncadd (!%p1509_p11), %s1126_s20, 4294967168  ;;  %s34_s18 = sadd.s32 1, %s1982_s18   ;;  %s2550_s13 = smov %s1966_s14 }
 0x65a   : > { %p31_p6 = scmp.ge.s32.totalorder %s34_s18, 4   ;;  %s2551_s14 = smov %s1970_s15 }
 0x65b   : > { %s2552_s15 = smov %s2315_s9  ;;  %s2553_s16 = smov %s1978_s17 }
 0x65c   : > { %s2554_s17 = smov %s2556_s26  ;;  %33 = sbr.rel (!%p31_p6) target bundleno = 17 (0x11), region = 155 }
 0x663   :  { %1131 = vsyncpa [#allocation5], 1 }
 0x664   :  { %1133 = vsyncpa [#allocation5 + $0x1], 1 }
 0x665   :  { %1134 = vsyncpa [#allocation8], 1 }
 0x666   :  { %1135 = vsyncpa [#allocation11], 1 }
 0x667   :  { %1136 = vsyncpa [#allocation14], 1 }
 0x668   :  { %1137 = vsyncpa [#allocation17], 1 }
 0x669   :  { %1138 = vsyncpa [#allocation6], 1 }
 0x66a   :  { %1140 = vsyncpa [#allocation6 + $0x1], 1 }
 0x66b   :  { %1141 = vsyncpa [#allocation21], 1 }
 0x66c   :  { %1143 = vsyncpa [#allocation21 + $0x1], 1 }

</bundles_post_ra>
